<compile_context>
chip_gen: v7x
topology: tpu7x:2x2x1
jax: 0.10.0
libtpu: 0.0.40
codegen_flags: <defaults>
</compile_context>

<pallas_src>
import functools

import numpy as np

import jax
import jax.numpy as jnp
from jax.experimental import pallas as pl
from jax.experimental.pallas import tpu as pltpu

NEG_SLOPE = 0.01  # torch.nn.LeakyReLU default negative slope

# Tap order matches PyTorch OIHW weight layout: t = kh*3 + kw, (oy, ox) = (kh-1, kw-1).
_TAPS = tuple((oy, ox) for oy in (-1, 0, 1) for ox in (-1, 0, 1))


def _tap_masks(H, W):
    """(9, H*W) f32 0/1 masks: tap (oy,ox) is valid at flattened pixel p=(h,w) iff
    the source pixel (h+oy, w+ox) lies inside the image (replaces zero padding and
    also zeroes rolls that cross image seams when several images are lane-stacked)."""
    P = H * W
    hh, ww = np.meshgrid(np.arange(H), np.arange(W), indexing="ij")
    hh = hh.reshape(P)
    ww = ww.reshape(P)
    masks = np.zeros((9, P), np.float32)
    for t, (oy, ox) in enumerate(_TAPS):
        valid = (hh + oy >= 0) & (hh + oy < H) & (ww + ox >= 0) & (ww + ox < W)
        masks[t, :] = valid.astype(np.float32)
    return masks


def _encoder_kernel(masks_ref, xs_ref, xt_ref, w1_ref, b1_ref, w2_ref, b2_ref,
                    os_ref, ot_ref, col1_ref, col2_ref, *, width, pix, bblk):
    # masks_ref : (9, L) f32          boundary masks per tap, tiled per image segment
    # xs_ref    : (bblk, Cin, P)      src images of this block (spatial on lanes)
    # xt_ref    : (bblk, Cin, P)      tgt images of this block
    # w1_ref    : (Cout, 9*Cin)       layer-1 weights, im2col-packed (tap-major, cin)
    # b1_ref    : (Cout, 1)
    # w2_ref    : (Cout, 9*Cout)      layer-2 weights
    # b2_ref    : (Cout, 1)
    # os_ref    : (bblk, Cout, P)     outputs (lane-dense stores)
    # ot_ref    : (bblk, Cout, P)
    # col1_ref  : (9*Cin,  L) f32     im2col scratch, layer 1
    # col2_ref  : (9*Cout, L) f32     im2col scratch, layer 2
    L = masks_ref.shape[-1]  # = 2 * bblk * pix

    # Lane-stack every image handled by this grid step: (Cin, L).
    parts = [xs_ref[i] for i in range(bblk)] + [xt_ref[i] for i in range(bblk)]
    x = jnp.concatenate(parts, axis=-1).astype(jnp.float32)

    def conv3x3_lrelu(x, w_ref, b_ref, col_ref):
        C = x.shape[0]
        # Build masked im2col block: row block t holds the tap-(oy,ox) shifted image.
        for t, (oy, ox) in enumerate(_TAPS):
            s = oy * width + ox  # flattened source offset for this tap
            if s == 0:
                col_ref[t * C:(t + 1) * C, :] = x          # center tap: no roll/mask
            else:
                # shifted[p] = x[(p + s) % L]  (pltpu.roll uses jnp.roll semantics)
                shifted = pltpu.roll(x, shift=(-s) % L, axis=1)
                col_ref[t * C:(t + 1) * C, :] = shifted * masks_ref[t:t + 1, :]
        # One MXU matmul per layer: (Cout, 9C) x (9C, L) -> (Cout, L), f32 acc.
        y = jnp.dot(w_ref[...], col_ref[...], preferred_element_type=jnp.float32)
        y = y + b_ref[...]                                  # bias broadcast on lanes
        return jnp.where(y >= 0.0, y, NEG_SLOPE * y)        # LeakyReLU

    a1 = conv3x3_lrelu(x, w1_ref, b1_ref, col1_ref)         # layer-1 act stays on-chip
    a2 = conv3x3_lrelu(a1, w2_ref, b2_ref, col2_ref)        # fused layer 2

    # Split the stacked result back into per-image outputs (256-lane-aligned slices).
    for i in range(bblk):
        os_ref[i] = a2[:, i * pix:(i + 1) * pix].astype(os_ref.dtype)
        ot_ref[i] = a2[:, (bblk + i) * pix:(bblk + i + 1) * pix].astype(ot_ref.dtype)


def init_encoder_params(key, infm, outfm, k=3):
    """Synthetic init mirroring kaiming_uniform_(a=0.01) weights + default bias.
    Weights stored in PyTorch OIHW layout: (Cout, Cin, k, k)."""
    def kaiming_uniform(key, shape, fan_in, a=NEG_SLOPE):
        gain = (2.0 / (1.0 + a * a)) ** 0.5
        bound = gain * (3.0 / fan_in) ** 0.5
        return jax.random.uniform(key, shape, jnp.float32, -bound, bound)

    def bias_uniform(key, shape, fan_in):
        bound = 1.0 / (fan_in ** 0.5)
        return jax.random.uniform(key, shape, jnp.float32, -bound, bound)

    k1, k2, k3, k4 = jax.random.split(key, 4)
    fan1 = infm * k * k
    fan2 = outfm * k * k
    w1 = kaiming_uniform(k1, (outfm, infm, k, k), fan1)
    b1 = bias_uniform(k2, (outfm,), fan1)
    w2 = kaiming_uniform(k3, (outfm, outfm, k, k), fan2)
    b2 = bias_uniform(k4, (outfm,), fan2)
    return dict(w1=w1, b1=b1, w2=w2, b2=b2)


@jax.jit
def encoder_forward(params, src_nchw, tgt_nchw):
    """Siamese encoder: returns (seq(src), seq(tgt)) in NCHW, matching PyTorch."""
    B, Cin, H, W = src_nchw.shape
    Cout = params["w1"].shape[0]
    assert params["w1"].shape[2] == 3, "kernel assumes k=3"
    P = H * W

    # Grid: 2 steps when B is even (keeps both v7x TensorCores busy; negligible
    # extra fixed cost on single-TC v5e/v6e), otherwise one fat step.
    num_steps = 2 if (B >= 2 and B % 2 == 0) else 1
    bblk = B // num_steps
    L = 2 * bblk * P  # lane width of the stacked slab per grid step

    # Weight repack (tiny, trace-time): OIHW -> (Cout, 9*C) with column order
    # ((kh*3 + kw) * C + cin), matching the im2col row order built in the kernel.
    w1k = jnp.transpose(params["w1"], (0, 2, 3, 1)).reshape(Cout, 9 * Cin)
    w2k = jnp.transpose(params["w2"], (0, 2, 3, 1)).reshape(Cout, 9 * Cout)
    b1k = params["b1"].reshape(Cout, 1)
    b2k = params["b2"].reshape(Cout, 1)
    masks = jnp.asarray(np.tile(_tap_masks(H, W), (1, 2 * bblk)))  # (9, L) constant

    kernel = functools.partial(_encoder_kernel, width=W, pix=P, bblk=bblk)

    out_s, out_t = pl.pallas_call(
        kernel,
        out_shape=(
            jax.ShapeDtypeStruct((B, Cout, P), src_nchw.dtype),
            jax.ShapeDtypeStruct((B, Cout, P), tgt_nchw.dtype),
        ),
        grid_spec=pltpu.PrefetchScalarGridSpec(
            num_scalar_prefetch=0,
            grid=(num_steps,),
            in_specs=[
                pl.BlockSpec((9, L), lambda b: (0, 0)),               # masks (resident)
                pl.BlockSpec((bblk, Cin, P), lambda b: (b, 0, 0)),    # src images
                pl.BlockSpec((bblk, Cin, P), lambda b: (b, 0, 0)),    # tgt images
                pl.BlockSpec((Cout, 9 * Cin), lambda b: (0, 0)),      # w1 (resident)
                pl.BlockSpec((Cout, 1), lambda b: (0, 0)),            # b1
                pl.BlockSpec((Cout, 9 * Cout), lambda b: (0, 0)),     # w2
                pl.BlockSpec((Cout, 1), lambda b: (0, 0)),            # b2
            ],
            out_specs=[
                pl.BlockSpec((bblk, Cout, P), lambda b: (b, 0, 0)),   # out src
                pl.BlockSpec((bblk, Cout, P), lambda b: (b, 0, 0)),   # out tgt
            ],
            scratch_shapes=[
                pltpu.VMEM((9 * Cin, L), jnp.float32),   # im2col scratch, layer 1
                pltpu.VMEM((9 * Cout, L), jnp.float32),  # im2col scratch, layer 2
            ],
        ),
        compiler_params=pltpu.CompilerParams(
            dimension_semantics=("parallel",)
        ),
    )(
        masks,
        src_nchw.reshape(B, Cin, P),   # free reshape, no transpose
        tgt_nchw.reshape(B, Cin, P),
        w1k, b1k, w2k, b2k,
    )

    # Free reshapes back to NCHW.
    return out_s.reshape(B, Cout, H, W), out_t.reshape(B, Cout, H, W)


def _reference_forward(params, src_nchw, tgt_nchw):
    """Plain-JAX reference (lax conv, OIHW weights) for verification."""
    def layer(x, w, b):
        y = jax.lax.conv_general_dilated(
            x, w, window_strides=(1, 1), padding="SAME",
            dimension_numbers=("NCHW", "OIHW", "NCHW"))
        y = y + b.reshape(1, -1, 1, 1)
        return jnp.where(y >= 0.0, y, NEG_SLOPE * y)

    def seq(x):
        x = layer(x, params["w1"], params["b1"])
        x = layer(x, params["w2"], params["b2"])
        return x

    return seq(src_nchw), seq(tgt_nchw)


if __name__ == "__main__":
    key = jax.random.PRNGKey(0)
    k_p, k_s, k_t = jax.random.split(key, 3)

    B, infm, outfm, H, W = 2, 4, 8, 16, 16
    params = init_encoder_params(k_p, infm, outfm, k=3)
    src = jax.random.normal(k_s, (B, infm, H, W), jnp.float32)
    tgt = jax.random.normal(k_t, (B, infm, H, W), jnp.float32)

    out_src, out_tgt = encoder_forward(params, src, tgt)
    jax.block_until_ready((out_src, out_tgt))

    ref_src, ref_tgt = _reference_forward(params, src, tgt)
    assert out_src.shape == (B, outfm, H, W) and out_tgt.shape == (B, outfm, H, W)
    assert jnp.allclose(out_src, ref_src, rtol=1e-4, atol=1e-4)
    assert jnp.allclose(out_tgt, ref_tgt, rtol=1e-4, atol=1e-4)

    print("KERNEL_OK")
</pallas_src>

<mosaic_0001>
module attributes {stable_mosaic.version = 11 : i64} {
  func.func @_encoder_kernel(%arg0: i32, %arg1: memref<9x512xf32, #tpu.memory_space<vmem>>, %arg2: memref<1x4x256xf32, #tpu.memory_space<vmem>>, %arg3: memref<1x4x256xf32, #tpu.memory_space<vmem>>, %arg4: memref<8x36xf32, #tpu.memory_space<vmem>>, %arg5: memref<8x1xf32, #tpu.memory_space<vmem>>, %arg6: memref<8x72xf32, #tpu.memory_space<vmem>>, %arg7: memref<8x1xf32, #tpu.memory_space<vmem>>, %arg8: memref<1x8x256xf32, #tpu.memory_space<vmem>>, %arg9: memref<1x8x256xf32, #tpu.memory_space<vmem>>, %arg10: memref<36x512xf32, #tpu.memory_space<vmem>>, %arg11: memref<72x512xf32, #tpu.memory_space<vmem>>) attributes {dimension_semantics = [#tpu.dimension_semantics<parallel>], iteration_bounds = array<i64: 2>, scalar_prefetch = 0 : i64, scratch_operands = 2 : i64, tpu.core_type = #tpu.core_type<tc>, window_params = [{pipeline_mode = #tpu.pipeline_mode<synchronous>, transform_indices = @transform_0, window_bounds = array<i64: 9, 512>}, {transform_indices = @transform_1, window_bounds = array<i64: 1, 4, 256>}, {transform_indices = @transform_2, window_bounds = array<i64: 1, 4, 256>}, {pipeline_mode = #tpu.pipeline_mode<synchronous>, transform_indices = @transform_3, window_bounds = array<i64: 8, 36>}, {pipeline_mode = #tpu.pipeline_mode<synchronous>, transform_indices = @transform_4, window_bounds = array<i64: 8, 1>}, {pipeline_mode = #tpu.pipeline_mode<synchronous>, transform_indices = @transform_5, window_bounds = array<i64: 8, 72>}, {pipeline_mode = #tpu.pipeline_mode<synchronous>, transform_indices = @transform_6, window_bounds = array<i64: 8, 1>}, {transform_indices = @transform_7, window_bounds = array<i64: 1, 8, 256>}, {transform_indices = @transform_8, window_bounds = array<i64: 1, 8, 256>}]} {
    %c0 = arith.constant 0 : index
    %c0_0 = arith.constant 0 : index
    %c0_1 = arith.constant 0 : index
    %0 = vector.load %arg2[%c0, %c0_0, %c0_1] : memref<1x4x256xf32, #tpu.memory_space<vmem>>, vector<1x4x256xf32>
    %1 = vector.shape_cast %0 : vector<1x4x256xf32> to vector<4x256xf32>
    %c0_2 = arith.constant 0 : index
    %c0_3 = arith.constant 0 : index
    %c0_4 = arith.constant 0 : index
    %2 = vector.load %arg3[%c0_2, %c0_3, %c0_4] : memref<1x4x256xf32, #tpu.memory_space<vmem>>, vector<1x4x256xf32>
    %3 = vector.shape_cast %2 : vector<1x4x256xf32> to vector<4x256xf32>
    %4 = tpu.concatenate %1, %3 in 1 : vector<4x256xf32>, vector<4x256xf32> -> vector<4x512xf32>
    %c17_i32 = arith.constant 17 : i32
    %5 = tpu.dynamic_rotate %4 by %c17_i32 dim 1 : vector<4x512xf32>, i32 -> vector<4x512xf32>
    %c0_5 = arith.constant 0 : index
    %c0_6 = arith.constant 0 : index
    %6 = vector.load %arg1[%c0_5, %c0_6] : memref<9x512xf32, #tpu.memory_space<vmem>>, vector<1x512xf32>
    %7 = vector.broadcast %6 : vector<1x512xf32> to vector<4x512xf32>
    %8 = arith.mulf %5, %7 : vector<4x512xf32>
    %c0_7 = arith.constant 0 : index
    %c0_8 = arith.constant 0 : index
    %9 = vector.load %arg10[%c0_7, %c0_8] : memref<36x512xf32, #tpu.memory_space<vmem>>, vector<4x512xf32>
    tpu.vector_store %arg10[%c0_7, %c0_8], %8 {strides = array<i32>} : memref<36x512xf32, #tpu.memory_space<vmem>>, vector<4x512xf32>,
    %c16_i32 = arith.constant 16 : i32
    %10 = tpu.dynamic_rotate %4 by %c16_i32 dim 1 : vector<4x512xf32>, i32 -> vector<4x512xf32>
    %c1 = arith.constant 1 : index
    %c0_9 = arith.constant 0 : index
    %11 = vector.load %arg1[%c1, %c0_9] : memref<9x512xf32, #tpu.memory_space<vmem>>, vector<1x512xf32>
    %12 = vector.broadcast %11 : vector<1x512xf32> to vector<4x512xf32>
    %13 = arith.mulf %10, %12 : vector<4x512xf32>
    %c4 = arith.constant 4 : index
    %c0_10 = arith.constant 0 : index
    %14 = vector.load %arg10[%c4, %c0_10] : memref<36x512xf32, #tpu.memory_space<vmem>>, vector<4x512xf32>
    tpu.vector_store %arg10[%c4, %c0_10], %13 {strides = array<i32>} : memref<36x512xf32, #tpu.memory_space<vmem>>, vector<4x512xf32>,
    %c15_i32 = arith.constant 15 : i32
    %15 = tpu.dynamic_rotate %4 by %c15_i32 dim 1 : vector<4x512xf32>, i32 -> vector<4x512xf32>
    %c2 = arith.constant 2 : index
    %c0_11 = arith.constant 0 : index
    %16 = vector.load %arg1[%c2, %c0_11] : memref<9x512xf32, #tpu.memory_space<vmem>>, vector<1x512xf32>
    %17 = vector.broadcast %16 : vector<1x512xf32> to vector<4x512xf32>
    %18 = arith.mulf %15, %17 : vector<4x512xf32>
    %c8 = arith.constant 8 : index
    %c0_12 = arith.constant 0 : index
    %19 = vector.load %arg10[%c8, %c0_12] : memref<36x512xf32, #tpu.memory_space<vmem>>, vector<4x512xf32>
    tpu.vector_store %arg10[%c8, %c0_12], %18 {strides = array<i32>} : memref<36x512xf32, #tpu.memory_space<vmem>>, vector<4x512xf32>,
    %c1_i32 = arith.constant 1 : i32
    %20 = tpu.dynamic_rotate %4 by %c1_i32 dim 1 : vector<4x512xf32>, i32 -> vector<4x512xf32>
    %c3 = arith.constant 3 : index
    %c0_13 = arith.constant 0 : index
    %21 = vector.load %arg1[%c3, %c0_13] : memref<9x512xf32, #tpu.memory_space<vmem>>, vector<1x512xf32>
    %22 = vector.broadcast %21 : vector<1x512xf32> to vector<4x512xf32>
    %23 = arith.mulf %20, %22 : vector<4x512xf32>
    %c12 = arith.constant 12 : index
    %c0_14 = arith.constant 0 : index
    %24 = vector.load %arg10[%c12, %c0_14] : memref<36x512xf32, #tpu.memory_space<vmem>>, vector<4x512xf32>
    tpu.vector_store %arg10[%c12, %c0_14], %23 {strides = array<i32>} : memref<36x512xf32, #tpu.memory_space<vmem>>, vector<4x512xf32>,
    %c16 = arith.constant 16 : index
    %c0_15 = arith.constant 0 : index
    %25 = vector.load %arg10[%c16, %c0_15] : memref<36x512xf32, #tpu.memory_space<vmem>>, vector<4x512xf32>
    tpu.vector_store %arg10[%c16, %c0_15], %4 {strides = array<i32>} : memref<36x512xf32, #tpu.memory_space<vmem>>, vector<4x512xf32>,
    %c511_i32 = arith.constant 511 : i32
    %26 = tpu.dynamic_rotate %4 by %c511_i32 dim 1 : vector<4x512xf32>, i32 -> vector<4x512xf32>
    %c5 = arith.constant 5 : index
    %c0_16 = arith.constant 0 : index
    %27 = vector.load %arg1[%c5, %c0_16] : memref<9x512xf32, #tpu.memory_space<vmem>>, vector<1x512xf32>
    %28 = vector.broadcast %27 : vector<1x512xf32> to vector<4x512xf32>
    %29 = arith.mulf %26, %28 : vector<4x512xf32>
    %c20 = arith.constant 20 : index
    %c0_17 = arith.constant 0 : index
    %30 = vector.load %arg10[%c20, %c0_17] : memref<36x512xf32, #tpu.memory_space<vmem>>, vector<4x512xf32>
    tpu.vector_store %arg10[%c20, %c0_17], %29 {strides = array<i32>} : memref<36x512xf32, #tpu.memory_space<vmem>>, vector<4x512xf32>,
    %c497_i32 = arith.constant 497 : i32
    %31 = tpu.dynamic_rotate %4 by %c497_i32 dim 1 : vector<4x512xf32>, i32 -> vector<4x512xf32>
    %c6 = arith.constant 6 : index
    %c0_18 = arith.constant 0 : index
    %32 = vector.load %arg1[%c6, %c0_18] : memref<9x512xf32, #tpu.memory_space<vmem>>, vector<1x512xf32>
    %33 = vector.broadcast %32 : vector<1x512xf32> to vector<4x512xf32>
    %34 = arith.mulf %31, %33 : vector<4x512xf32>
    %c24 = arith.constant 24 : index
    %c0_19 = arith.constant 0 : index
    %35 = vector.load %arg10[%c24, %c0_19] : memref<36x512xf32, #tpu.memory_space<vmem>>, vector<4x512xf32>
    tpu.vector_store %arg10[%c24, %c0_19], %34 {strides = array<i32>} : memref<36x512xf32, #tpu.memory_space<vmem>>, vector<4x512xf32>,
    %c496_i32 = arith.constant 496 : i32
    %36 = tpu.dynamic_rotate %4 by %c496_i32 dim 1 : vector<4x512xf32>, i32 -> vector<4x512xf32>
    %c7 = arith.constant 7 : index
    %c0_20 = arith.constant 0 : index
    %37 = vector.load %arg1[%c7, %c0_20] : memref<9x512xf32, #tpu.memory_space<vmem>>, vector<1x512xf32>
    %38 = vector.broadcast %37 : vector<1x512xf32> to vector<4x512xf32>
    %39 = arith.mulf %36, %38 : vector<4x512xf32>
    %c28 = arith.constant 28 : index
    %c0_21 = arith.constant 0 : index
    %40 = vector.load %arg10[%c28, %c0_21] : memref<36x512xf32, #tpu.memory_space<vmem>>, vector<4x512xf32>
    tpu.vector_store %arg10[%c28, %c0_21], %39 {strides = array<i32>} : memref<36x512xf32, #tpu.memory_space<vmem>>, vector<4x512xf32>,
    %c495_i32 = arith.constant 495 : i32
    %41 = tpu.dynamic_rotate %4 by %c495_i32 dim 1 : vector<4x512xf32>, i32 -> vector<4x512xf32>
    %c8_22 = arith.constant 8 : index
    %c0_23 = arith.constant 0 : index
    %42 = vector.load %arg1[%c8_22, %c0_23] : memref<9x512xf32, #tpu.memory_space<vmem>>, vector<1x512xf32>
    %43 = vector.broadcast %42 : vector<1x512xf32> to vector<4x512xf32>
    %44 = arith.mulf %41, %43 : vector<4x512xf32>
    %c32 = arith.constant 32 : index
    %c0_24 = arith.constant 0 : index
    %45 = vector.load %arg10[%c32, %c0_24] : memref<36x512xf32, #tpu.memory_space<vmem>>, vector<4x512xf32>
    tpu.vector_store %arg10[%c32, %c0_24], %44 {strides = array<i32>} : memref<36x512xf32, #tpu.memory_space<vmem>>, vector<4x512xf32>,
    %c0_25 = arith.constant 0 : index
    %c0_26 = arith.constant 0 : index
    %46 = vector.load %arg4[%c0_25, %c0_26] : memref<8x36xf32, #tpu.memory_space<vmem>>, vector<8x36xf32>
    %c0_27 = arith.constant 0 : index
    %c0_28 = arith.constant 0 : index
    %47 = vector.load %arg10[%c0_27, %c0_28] : memref<36x512xf32, #tpu.memory_space<vmem>>, vector<36x512xf32>
    %cst = arith.constant dense<0.000000e+00> : vector<8x512xf32>
    %48 = tpu.matmul %46, %47, %cst {dimension_numbers = #tpu.dot_dimension_numbers<[1], [0], [0], [1], [0, 0, 1, 1], [], []>} : vector<8x36xf32>, vector<36x512xf32>, vector<8x512xf32> -> vector<8x512xf32>
    %c0_29 = arith.constant 0 : index
    %c0_30 = arith.constant 0 : index
    %49 = vector.load %arg5[%c0_29, %c0_30] : memref<8x1xf32, #tpu.memory_space<vmem>>, vector<8x1xf32>
    %50 = vector.broadcast %49 : vector<8x1xf32> to vector<8x512xf32>
    %51 = arith.addf %48, %50 : vector<8x512xf32>
    %cst_31 = arith.constant 0.000000e+00 : f32
    %52 = vector.broadcast %cst_31 : f32 to vector<8x512xf32>
    %53 = arith.cmpf oge, %51, %52 : vector<8x512xf32>
    %cst_32 = arith.constant 0.00999999977 : f32
    %54 = vector.broadcast %cst_32 : f32 to vector<8x512xf32>
    %55 = arith.mulf %54, %51 : vector<8x512xf32>
    %56 = arith.select %53, %51, %55 : vector<8x512xi1>, vector<8x512xf32>
    %c17_i32_33 = arith.constant 17 : i32
    %57 = tpu.dynamic_rotate %56 by %c17_i32_33 dim 1 : vector<8x512xf32>, i32 -> vector<8x512xf32>
    %c0_34 = arith.constant 0 : index
    %c0_35 = arith.constant 0 : index
    %58 = vector.load %arg1[%c0_34, %c0_35] : memref<9x512xf32, #tpu.memory_space<vmem>>, vector<1x512xf32>
    %59 = vector.broadcast %58 : vector<1x512xf32> to vector<8x512xf32>
    %60 = arith.mulf %57, %59 : vector<8x512xf32>
    %c0_36 = arith.constant 0 : index
    %c0_37 = arith.constant 0 : index
    %61 = vector.load %arg11[%c0_36, %c0_37] : memref<72x512xf32, #tpu.memory_space<vmem>>, vector<8x512xf32>
    tpu.vector_store %arg11[%c0_36, %c0_37], %60 {strides = array<i32>} : memref<72x512xf32, #tpu.memory_space<vmem>>, vector<8x512xf32>,
    %c16_i32_38 = arith.constant 16 : i32
    %62 = tpu.dynamic_rotate %56 by %c16_i32_38 dim 1 : vector<8x512xf32>, i32 -> vector<8x512xf32>
    %c1_39 = arith.constant 1 : index
    %c0_40 = arith.constant 0 : index
    %63 = vector.load %arg1[%c1_39, %c0_40] : memref<9x512xf32, #tpu.memory_space<vmem>>, vector<1x512xf32>
    %64 = vector.broadcast %63 : vector<1x512xf32> to vector<8x512xf32>
    %65 = arith.mulf %62, %64 : vector<8x512xf32>
    %c8_41 = arith.constant 8 : index
    %c0_42 = arith.constant 0 : index
    %66 = vector.load %arg11[%c8_41, %c0_42] : memref<72x512xf32, #tpu.memory_space<vmem>>, vector<8x512xf32>
    tpu.vector_store %arg11[%c8_41, %c0_42], %65 {strides = array<i32>} : memref<72x512xf32, #tpu.memory_space<vmem>>, vector<8x512xf32>,
    %c15_i32_43 = arith.constant 15 : i32
    %67 = tpu.dynamic_rotate %56 by %c15_i32_43 dim 1 : vector<8x512xf32>, i32 -> vector<8x512xf32>
    %c2_44 = arith.constant 2 : index
    %c0_45 = arith.constant 0 : index
    %68 = vector.load %arg1[%c2_44, %c0_45] : memref<9x512xf32, #tpu.memory_space<vmem>>, vector<1x512xf32>
    %69 = vector.broadcast %68 : vector<1x512xf32> to vector<8x512xf32>
    %70 = arith.mulf %67, %69 : vector<8x512xf32>
    %c16_46 = arith.constant 16 : index
    %c0_47 = arith.constant 0 : index
    %71 = vector.load %arg11[%c16_46, %c0_47] : memref<72x512xf32, #tpu.memory_space<vmem>>, vector<8x512xf32>
    tpu.vector_store %arg11[%c16_46, %c0_47], %70 {strides = array<i32>} : memref<72x512xf32, #tpu.memory_space<vmem>>, vector<8x512xf32>,
    %c1_i32_48 = arith.constant 1 : i32
    %72 = tpu.dynamic_rotate %56 by %c1_i32_48 dim 1 : vector<8x512xf32>, i32 -> vector<8x512xf32>
    %c3_49 = arith.constant 3 : index
    %c0_50 = arith.constant 0 : index
    %73 = vector.load %arg1[%c3_49, %c0_50] : memref<9x512xf32, #tpu.memory_space<vmem>>, vector<1x512xf32>
    %74 = vector.broadcast %73 : vector<1x512xf32> to vector<8x512xf32>
    %75 = arith.mulf %72, %74 : vector<8x512xf32>
    %c24_51 = arith.constant 24 : index
    %c0_52 = arith.constant 0 : index
    %76 = vector.load %arg11[%c24_51, %c0_52] : memref<72x512xf32, #tpu.memory_space<vmem>>, vector<8x512xf32>
    tpu.vector_store %arg11[%c24_51, %c0_52], %75 {strides = array<i32>} : memref<72x512xf32, #tpu.memory_space<vmem>>, vector<8x512xf32>,
    %c32_53 = arith.constant 32 : index
    %c0_54 = arith.constant 0 : index
    %77 = vector.load %arg11[%c32_53, %c0_54] : memref<72x512xf32, #tpu.memory_space<vmem>>, vector<8x512xf32>
    tpu.vector_store %arg11[%c32_53, %c0_54], %56 {strides = array<i32>} : memref<72x512xf32, #tpu.memory_space<vmem>>, vector<8x512xf32>,
    %c511_i32_55 = arith.constant 511 : i32
    %78 = tpu.dynamic_rotate %56 by %c511_i32_55 dim 1 : vector<8x512xf32>, i32 -> vector<8x512xf32>
    %c5_56 = arith.constant 5 : index
    %c0_57 = arith.constant 0 : index
    %79 = vector.load %arg1[%c5_56, %c0_57] : memref<9x512xf32, #tpu.memory_space<vmem>>, vector<1x512xf32>
    %80 = vector.broadcast %79 : vector<1x512xf32> to vector<8x512xf32>
    %81 = arith.mulf %78, %80 : vector<8x512xf32>
    %c40 = arith.constant 40 : index
    %c0_58 = arith.constant 0 : index
    %82 = vector.load %arg11[%c40, %c0_58] : memref<72x512xf32, #tpu.memory_space<vmem>>, vector<8x512xf32>
    tpu.vector_store %arg11[%c40, %c0_58], %81 {strides = array<i32>} : memref<72x512xf32, #tpu.memory_space<vmem>>, vector<8x512xf32>,
    %c497_i32_59 = arith.constant 497 : i32
    %83 = tpu.dynamic_rotate %56 by %c497_i32_59 dim 1 : vector<8x512xf32>, i32 -> vector<8x512xf32>
    %c6_60 = arith.constant 6 : index
    %c0_61 = arith.constant 0 : index
    %84 = vector.load %arg1[%c6_60, %c0_61] : memref<9x512xf32, #tpu.memory_space<vmem>>, vector<1x512xf32>
    %85 = vector.broadcast %84 : vector<1x512xf32> to vector<8x512xf32>
    %86 = arith.mulf %83, %85 : vector<8x512xf32>
    %c48 = arith.constant 48 : index
    %c0_62 = arith.constant 0 : index
    %87 = vector.load %arg11[%c48, %c0_62] : memref<72x512xf32, #tpu.memory_space<vmem>>, vector<8x512xf32>
    tpu.vector_store %arg11[%c48, %c0_62], %86 {strides = array<i32>} : memref<72x512xf32, #tpu.memory_space<vmem>>, vector<8x512xf32>,
    %c496_i32_63 = arith.constant 496 : i32
    %88 = tpu.dynamic_rotate %56 by %c496_i32_63 dim 1 : vector<8x512xf32>, i32 -> vector<8x512xf32>
    %c7_64 = arith.constant 7 : index
    %c0_65 = arith.constant 0 : index
    %89 = vector.load %arg1[%c7_64, %c0_65] : memref<9x512xf32, #tpu.memory_space<vmem>>, vector<1x512xf32>
    %90 = vector.broadcast %89 : vector<1x512xf32> to vector<8x512xf32>
    %91 = arith.mulf %88, %90 : vector<8x512xf32>
    %c56 = arith.constant 56 : index
    %c0_66 = arith.constant 0 : index
    %92 = vector.load %arg11[%c56, %c0_66] : memref<72x512xf32, #tpu.memory_space<vmem>>, vector<8x512xf32>
    tpu.vector_store %arg11[%c56, %c0_66], %91 {strides = array<i32>} : memref<72x512xf32, #tpu.memory_space<vmem>>, vector<8x512xf32>,
    %c495_i32_67 = arith.constant 495 : i32
    %93 = tpu.dynamic_rotate %56 by %c495_i32_67 dim 1 : vector<8x512xf32>, i32 -> vector<8x512xf32>
    %c8_68 = arith.constant 8 : index
    %c0_69 = arith.constant 0 : index
    %94 = vector.load %arg1[%c8_68, %c0_69] : memref<9x512xf32, #tpu.memory_space<vmem>>, vector<1x512xf32>
    %95 = vector.broadcast %94 : vector<1x512xf32> to vector<8x512xf32>
    %96 = arith.mulf %93, %95 : vector<8x512xf32>
    %c64 = arith.constant 64 : index
    %c0_70 = arith.constant 0 : index
    %97 = vector.load %arg11[%c64, %c0_70] : memref<72x512xf32, #tpu.memory_space<vmem>>, vector<8x512xf32>
    tpu.vector_store %arg11[%c64, %c0_70], %96 {strides = array<i32>} : memref<72x512xf32, #tpu.memory_space<vmem>>, vector<8x512xf32>,
    %c0_71 = arith.constant 0 : index
    %c0_72 = arith.constant 0 : index
    %98 = vector.load %arg6[%c0_71, %c0_72] : memref<8x72xf32, #tpu.memory_space<vmem>>, vector<8x72xf32>
    %c0_73 = arith.constant 0 : index
    %c0_74 = arith.constant 0 : index
    %99 = vector.load %arg11[%c0_73, %c0_74] : memref<72x512xf32, #tpu.memory_space<vmem>>, vector<72x512xf32>
    %cst_75 = arith.constant dense<0.000000e+00> : vector<8x512xf32>
    %100 = tpu.matmul %98, %99, %cst_75 {dimension_numbers = #tpu.dot_dimension_numbers<[1], [0], [0], [1], [0, 0, 1, 1], [], []>} : vector<8x72xf32>, vector<72x512xf32>, vector<8x512xf32> -> vector<8x512xf32>
    %c0_76 = arith.constant 0 : index
    %c0_77 = arith.constant 0 : index
    %101 = vector.load %arg7[%c0_76, %c0_77] : memref<8x1xf32, #tpu.memory_space<vmem>>, vector<8x1xf32>
    %102 = vector.broadcast %101 : vector<8x1xf32> to vector<8x512xf32>
    %103 = arith.addf %100, %102 : vector<8x512xf32>
    %cst_78 = arith.constant 0.000000e+00 : f32
    %104 = vector.broadcast %cst_78 : f32 to vector<8x512xf32>
    %105 = arith.cmpf oge, %103, %104 : vector<8x512xf32>
    %cst_79 = arith.constant 0.00999999977 : f32
    %106 = vector.broadcast %cst_79 : f32 to vector<8x512xf32>
    %107 = arith.mulf %106, %103 : vector<8x512xf32>
    %108 = arith.select %105, %103, %107 : vector<8x512xi1>, vector<8x512xf32>
    %109 = vector.extract_strided_slice %108 {offsets = [0, 0], sizes = [8, 256], strides = [1, 1]} : vector<8x512xf32> to vector<8x256xf32>
    %c0_80 = arith.constant 0 : index
    %c0_81 = arith.constant 0 : index
    %c0_82 = arith.constant 0 : index
    %110 = vector.load %arg8[%c0_80, %c0_81, %c0_82] : memref<1x8x256xf32, #tpu.memory_space<vmem>>, vector<1x8x256xf32>
    %111 = vector.shape_cast %110 : vector<1x8x256xf32> to vector<8x256xf32>
    %112 = vector.shape_cast %109 : vector<8x256xf32> to vector<1x8x256xf32>
    tpu.vector_store %arg8[%c0_80, %c0_81, %c0_82], %112 {strides = array<i32>} : memref<1x8x256xf32, #tpu.memory_space<vmem>>, vector<1x8x256xf32>,
    %113 = vector.extract_strided_slice %108 {offsets = [0, 256], sizes = [8, 256], strides = [1, 1]} : vector<8x512xf32> to vector<8x256xf32>
    %c0_83 = arith.constant 0 : index
    %c0_84 = arith.constant 0 : index
    %c0_85 = arith.constant 0 : index
    %114 = vector.load %arg9[%c0_83, %c0_84, %c0_85] : memref<1x8x256xf32, #tpu.memory_space<vmem>>, vector<1x8x256xf32>
    %115 = vector.shape_cast %114 : vector<1x8x256xf32> to vector<8x256xf32>
    %116 = vector.shape_cast %113 : vector<8x256xf32> to vector<1x8x256xf32>
    tpu.vector_store %arg9[%c0_83, %c0_84, %c0_85], %116 {strides = array<i32>} : memref<1x8x256xf32, #tpu.memory_space<vmem>>, vector<1x8x256xf32>,
    return
  }
  func.func @transform_0(%arg0: i32) -> (i32, i32) {
    %c0_i32 = arith.constant 0 : i32
    %c0_i32_0 = arith.constant 0 : i32
    %c0_i32_1 = arith.constant 0 : i32
    return %c0_i32, %c0_i32_0 : i32, i32
  }
  func.func @transform_1(%arg0: i32) -> (i32, i32, i32) {
    %c0_i32 = arith.constant 0 : i32
    %c0_i32_0 = arith.constant 0 : i32
    %c0_i32_1 = arith.constant 0 : i32
    return %arg0, %c0_i32, %c0_i32_0 : i32, i32, i32
  }
  func.func @transform_2(%arg0: i32) -> (i32, i32, i32) {
    %c0_i32 = arith.constant 0 : i32
    %c0_i32_0 = arith.constant 0 : i32
    %c0_i32_1 = arith.constant 0 : i32
    return %arg0, %c0_i32, %c0_i32_0 : i32, i32, i32
  }
  func.func @transform_3(%arg0: i32) -> (i32, i32) {
    %c0_i32 = arith.constant 0 : i32
    %c0_i32_0 = arith.constant 0 : i32
    %c0_i32_1 = arith.constant 0 : i32
    return %c0_i32, %c0_i32_0 : i32, i32
  }
  func.func @transform_4(%arg0: i32) -> (i32, i32) {
    %c0_i32 = arith.constant 0 : i32
    %c0_i32_0 = arith.constant 0 : i32
    %c0_i32_1 = arith.constant 0 : i32
    return %c0_i32, %c0_i32_0 : i32, i32
  }
  func.func @transform_5(%arg0: i32) -> (i32, i32) {
    %c0_i32 = arith.constant 0 : i32
    %c0_i32_0 = arith.constant 0 : i32
    %c0_i32_1 = arith.constant 0 : i32
    return %c0_i32, %c0_i32_0 : i32, i32
  }
  func.func @transform_6(%arg0: i32) -> (i32, i32) {
    %c0_i32 = arith.constant 0 : i32
    %c0_i32_0 = arith.constant 0 : i32
    %c0_i32_1 = arith.constant 0 : i32
    return %c0_i32, %c0_i32_0 : i32, i32
  }
  func.func @transform_7(%arg0: i32) -> (i32, i32, i32) {
    %c0_i32 = arith.constant 0 : i32
    %c0_i32_0 = arith.constant 0 : i32
    %c0_i32_1 = arith.constant 0 : i32
    return %arg0, %c0_i32, %c0_i32_0 : i32, i32, i32
  }
  func.func @transform_8(%arg0: i32) -> (i32, i32, i32) {
    %c0_i32 = arith.constant 0 : i32
    %c0_i32_0 = arith.constant 0 : i32
    %c0_i32_1 = arith.constant 0 : i32
    return %arg0, %c0_i32, %c0_i32_0 : i32, i32, i32
  }
}

</mosaic_0001>

<bundles_post_ra>
// kernel: encoder_forward.1
= control target key start
LH: loop header
LB: loop body
LE: loop exit
PB: predicated region body
PF: predicated region fallthrough
CT: control target
= control target key end

     0   :  { %s1768_s27 = smov 0   ;;  %s2177_s0 = inlined_call_operand.vmem [shape: f32[9,512], index: 0, kind: input, shape index: {}]   ;;  %s2178_s1 = inlined_call_operand.vmem [shape: f32[2,4,256], index: 1, kind: input, shape index: {}]   ;;  %s2179_s2 = inlined_call_operand.vmem [shape: f32[2,4,256], index: 2, kind: input, shape index: {}]   ;;  %s2180_s3 = inlined_call_operand.vmem [shape: f32[8,36], index: 3, kind: input, shape index: {}]   ;;  %s2181_s4 = inlined_call_operand.vmem [shape: f32[8,1], index: 4, kind: input, shape index: {}]   ;;  %s2182_s5 = inlined_call_operand.vmem [shape: f32[8,72], index: 5, kind: input, shape index: {}]   ;;  %s2183_s6 = inlined_call_operand.vmem [shape: f32[8,1], index: 6, kind: input, shape index: {}]   ;;  %s2184_s7 = inlined_call_operand.vmem [shape: f32[2,8,256], index: 7, kind: output, shape index: {0}]   ;;  %s2185_s8 = inlined_call_operand.vmem [shape: f32[2,8,256], index: 8, kind: output, shape index: {1}]  }
   0x1 LB: > { %s1595_s28 = sadd.s32 4294967295, %s1711_s27   ;;  %p1599_p0 = scmp.ge.s32.totalorder %s1711_s27, 1  ;;  %s1711_s27 = sphi %s1768_s27, %s19_s27  }
   0x2   : > { %p275_p1 = scmp.lt.s32.totalorder %s1711_s27, 3 }
   0x4   : > { %p276_p2 = pnand %p1599_p0, %p275_p1 }
   0x5   : > { %p319_p3 = scmp.lt.s32.totalorder (!%p276_p2), %s1595_s28, 1  ;;  %s1713_s14 = smov (!%p276_p2), 16   ;;  %v1721_v4 = vmov (!%p276_p2), 0.0   ;;  %v773_v5 = vld [vmem:[%s2181_s4] sm:$0xff] (!%p276_p2)  ;;  %v1722_v6 = vmov (!%p276_p2), 0   ;;  %v355_v7 = vlaneseq (!%p276_p2)  ;;  %vm783_vm8 = vcmask (!%p276_p2), 1043456  }
   0x6   : > { %279 = sbr.rel (%p276_p2) target bundleno = 826 (0x33a), region = 48  ;;  %s1714_s15 = smov (!%p276_p2), 1   ;;  %860 = vmatprep.mubr.f32.mxu0 (!%p276_p2), %v1721_v4  ;;  %931 = vmatprep.mubr.f32.mxu1 (!%p276_p2), %v1721_v4  ;;  %v1608_v12 = vld [vmem:[%s2177_s0 + $0x1] ss:$8 sm:$0xf] (!%p276_p2)  ;;  %vm779_vm9 = vcmask (!%p276_p2), 293888  }
   0x7   : > { %s1715_s16 = smov (!%p276_p2), 17   ;;  %s1716_s17 = smov (!%p276_p2), 15   ;;  %1702 = vset.pattern.permute.xlu0 (!%p276_p2), %v1722_v6  ;;  %v365_v8 = vshrl.u32 (!%p276_p2), %v355_v7, 7  ;;  %v1822_v9 = vand.u32 (!%p276_p2), 127, %v355_v7  ;;  %vm1333_vm14 = vcmask (!%p276_p2), 588800  }
   0x8   : > { %s1717_s18 = smov (!%p276_p2), 127   ;;  %s1718_s19 = smov (!%p276_p2), 112   ;;  %v1610_v19 = vld [vmem:[%s2177_s0 + $0x3] ss:$8 sm:$0xf] (!%p276_p2) }
   0x9   : > { %s1719_s20 = smov (!%p276_p2), 113   ;;  %s1720_s21 = smov (!%p276_p2), 111   ;;  %v1824_v10 = vsub.s32 (!%p276_p2), 0, %v365_v8  ;;  %v1826_v11 = vsub.s32 (!%p276_p2), 3, %v365_v8  ;;  %v1831_v15 = vsub.s32 (!%p276_p2), 1, %v365_v8  ;;  %v1833_v16 = vsub.s32 (!%p276_p2), 2, %v365_v8 }
   0xa   : > { %vm400_vm0 = vcmp.lt.s32.totalorder (!%p276_p2), %v1822_v9, 16  ;;  %vm500_vm1 = vcmp.lt.s32.totalorder (!%p276_p2), %v1822_v9, 1  ;;  %v362_v42 = vld [vmem:[%s2177_s0] ss:$8 sm:$0xf] (!%p276_p2)  ;;  %vm357_vm2 = vcmp.lt.s32.totalorder (!%p276_p2), %v1822_v9, 17 }
   0xb   : > { %v411_v17 = vrot.slane (!%p276_p2), %v1608_v12, %v1824_v10  ;;  %v423_v18 = vrot.slane (!%p276_p2), %v1608_v12, %v1826_v11  ;;  %v515_v24 = vrot.slane (!%p276_p2), %v1610_v19, %v1831_v15  ;;  %v415_v27 = vrot.slane (!%p276_p2), %v1608_v12, %v1831_v15 }
   0xc   : > { %v419_v28 = vrot.slane (!%p276_p2), %v1608_v12, %v1833_v16  ;;  %v511_v33 = vrot.slane (!%p276_p2), %v1610_v19, %v1824_v10  ;;  %v519_v37 = vrot.slane (!%p276_p2), %v1610_v19, %v1833_v16  ;;  %v523_v41 = vrot.slane (!%p276_p2), %v1610_v19, %v1826_v11 }
   0xd   : > { %s2187_s28 = smov (!%p319_p3, %s1595_s28), 1  ;;  %v371_v54 = vrot.slane %v362_v42, %v1831_v15  ;;  %v367_v62 = vrot.slane %v362_v42, %v1824_v10  ;;  %v375_v63 = vrot.slane %v362_v42, %v1833_v16  ;;  %vm456_vm3 = vcmp.lt.s32.totalorder %v1822_v9, 15 }
   0xe   : > { %s1632_s29 = sshll.u32 %s2187_s28, 3  ;;  %vm560_vm4 = vcmp.lt.s32.totalorder %v1822_v9, 127  ;;  %vm660_vm5 = vcmp.lt.s32.totalorder %v1822_v9, 112  ;;  %vm616_vm6 = vcmp.lt.s32.totalorder %v1822_v9, 113  ;;  %vm716_vm7 = vcmp.lt.s32.totalorder %v1822_v9, 111 }
   0xf   : > { %s328_s10 = scalar_lea.vmem %s2179_s2, %s1632_s29  ;;  %s323_s13 = scalar_lea.vmem %s2178_s1, %s1632_s29 }
  0x10   : > { %v340_v0 = vld [vmem:[%s328_s10] sm:$0xff] }
  0x11   : > { %v339_v1 = vld [vmem:[%s323_s13] sm:$0xff]  ;;  %396 = vrot.lane.b32.xlu1 %v340_v0, %s1713_s14  ;;  %550 = vst [vmem:[#allocation2 + $0x50] sm:$0xf] %v340_v0  ;;  %v345_v2 = vcombine.high %v340_v0, %v340_v0 }
  0x12   : > { %392 = vrot.lane.b32.xlu0 %v339_v1, %s1713_s14  ;;  %548 = vst [vmem:[#allocation2 + $0x40] sm:$0xf] %v339_v1  ;;  %v342_v3 = vcombine.high %v339_v1, %v339_v1 }
  0x13   : > { %551 = vst [vmem:[#allocation2 + $0x58] sm:$0xf] %v345_v2 }
  0x14   : > { %549 = vst [vmem:[#allocation2 + $0x48] sm:$0xf] %v342_v3 }
  0x15   : > { %398 = vrot.lane.b32.xlu1 %v345_v2, %s1713_s14 }
  0x16   : > { %492 = vrot.lane.b32.xlu0 %v339_v1, %s1714_s15 }
  0x19   : > { %494 = vrot.lane.b32.xlu1 %v342_v3, %s1714_s15 }
  0x1a   : > { %394 = vrot.lane.b32.xlu0 %v342_v3, %s1713_s14 }
  0x1d   : > { %498 = vrot.lane.b32.xlu1 %v345_v2, %s1714_s15 }
  0x1e   : > { %496 = vrot.lane.b32.xlu0 %v340_v0, %s1714_s15 }
  0x21   : > { %349 = vrot.lane.b32.xlu1 %v342_v3, %s1715_s16 }
  0x22   : > { %347 = vrot.lane.b32.xlu0 %v339_v1, %s1715_s16 }
  0x25   : > { %353 = vrot.lane.b32.xlu1 %v345_v2, %s1715_s16 }
  0x26   : > { %351 = vrot.lane.b32.xlu0 %v340_v0, %s1715_s16 }
  0x29   : > { %450 = vrot.lane.b32.xlu1 %v342_v3, %s1716_s17 }
  0x2a   : > { %448 = vrot.lane.b32.xlu0 %v339_v1, %s1716_s17 }
  0x2d   : > { %454 = vrot.lane.b32.xlu1 %v345_v2, %s1716_s17 }
  0x2e   : > { %452 = vrot.lane.b32.xlu0 %v340_v0, %s1716_s17 }
  0x31   : > { %554 = vrot.lane.b32.xlu1 %v342_v3, %s1717_s18 }
  0x32   : > { %552 = vrot.lane.b32.xlu0 %v339_v1, %s1717_s18 }
  0x35   : > { %558 = vrot.lane.b32.xlu1 %v345_v2, %s1717_s18 }
  0x36   : > { %556 = vrot.lane.b32.xlu0 %v340_v0, %s1717_s18 }
  0x39   : > { %654 = vrot.lane.b32.xlu1 %v342_v3, %s1718_s19 }
  0x3a   : > { %652 = vrot.lane.b32.xlu0 %v339_v1, %s1718_s19 }
  0x3d   : > { %658 = vrot.lane.b32.xlu1 %v345_v2, %s1718_s19 }
  0x3e   : > { %656 = vrot.lane.b32.xlu0 %v340_v0, %s1718_s19 }
  0x41   : > { %610 = vrot.lane.b32.xlu1 %v342_v3, %s1719_s20 }
  0x42   : > { %608 = vrot.lane.b32.xlu0 %v339_v1, %s1719_s20 }
  0x45   : > { %614 = vrot.lane.b32.xlu1 %v345_v2, %s1719_s20 }
  0x46   : > { %612 = vrot.lane.b32.xlu0 %v340_v0, %s1719_s20 }
  0x49   : > { %710 = vrot.lane.b32.xlu1 %v342_v3, %s1720_s21 }
  0x4a   : > { %708 = vrot.lane.b32.xlu0 %v339_v1, %s1720_s21  ;;  %v1609_v1 = vld [vmem:[%s2177_s0 + $0x2] ss:$8 sm:$0xf] }
  0x4d   : > { %714 = vrot.lane.b32.xlu1 %v345_v2, %s1720_s21 }
  0x4e   : > { %712 = vrot.lane.b32.xlu0 %v340_v0, %s1720_s21  ;;  %v379_v0 = vrot.slane %v362_v42, %v1826_v11 }
  0x52   : > { %776 = vperm.xlu0 %1702, %v773_v5  }
  0x83   : > { %v397_v13 = vpop.permute.xlu1 %396 }
  0x84   : > { %v393_v14 = vpop.permute.xlu0 %392 }
  0x87   : > { %v399_v20 = vpop.permute.xlu1 %398 }
  0x88   : > { %v493_v21 = vpop.permute.xlu0 %492  ;;  %v401_v22 = vsel %vm400_vm0, %v397_v13, %v399_v20  ;;  %v404_v23 = vsel %vm400_vm0, %v399_v20, %v393_v14 }
  0x89   : > { %v428_v25 = vmul.f32 %v411_v17, %v404_v23  ;;  %v431_v26 = vmul.f32 %v423_v18, %v401_v22  ;;  %v475_v22 = vrot.slane %v1609_v1, %v1833_v16  ;;  %v479_v23 = vrot.slane %v1609_v1, %v1826_v11 }
  0x8b   : > { %v436_v29 = vrot.slane %v428_v25, 4  ;;  %v439_v30 = vrot.slane %v431_v26, 4  ;;  %v495_v31 = vpop.permute.xlu1 %494 }
  0x8c   : > { %v395_v32 = vpop.permute.xlu0 %394  ;;  %v503_v34 = vsel %vm500_vm1, %v493_v21, %v495_v31 }
  0x8d   : > { %v402_v35 = vsel %vm400_vm0, %v395_v32, %v397_v13  ;;  %v403_v36 = vsel %vm400_vm0, %v393_v14, %v395_v32  ;;  %444 = vst [vmem:[#allocation2] sm:$0xf0] %v436_v29  ;;  %447 = vst [vmem:[#allocation2 + $0x18] sm:$0xf0] %v439_v30  ;;  %v529_v38 = vmul.f32 %v515_v24, %v503_v34 }
  0x8e   : > { %v429_v39 = vmul.f32 %v415_v27, %v403_v36  ;;  %v430_v40 = vmul.f32 %v419_v28, %v402_v35  ;;  %v471_v14 = vrot.slane %v1609_v1, %v1831_v15  ;;  %v1611_v24 = vld [vmem:[%s2177_s0 + $0x5] ss:$8 sm:$0xf] }
  0x8f   : > { %v537_v43 = vrot.slane %v529_v38, 4  ;;  %v499_v46 = vpop.permute.xlu1 %498  ;;  %v583_v38 = vrot.slane %v1611_v24, %v1826_v11 }
  0x90   : > { %v437_v44 = vrot.slane %v429_v39, 4  ;;  %v438_v45 = vrot.slane %v430_v40, 4  ;;  %v497_v47 = vpop.permute.xlu0 %496  ;;  %v504_v48 = vsel %vm500_vm1, %v499_v46, %v493_v21  ;;  %v467_v21 = vrot.slane %v1609_v1, %v1824_v10 }
  0x91   : > { %v501_v49 = vsel %vm500_vm1, %v497_v47, %v499_v46  ;;  %v502_v50 = vsel %vm500_vm1, %v495_v31, %v497_v47  ;;  %545 = vst [vmem:[#allocation2 + $0x28] sm:$0xf0] %v537_v43  ;;  %v528_v51 = vmul.f32 %v511_v33, %v504_v48  ;;  %v571_v33 = vrot.slane %v1611_v24, %v1824_v10  ;;  %v1613_v43 = vld [vmem:[%s2177_s0 + $0x7] ss:$8 sm:$0xf] }
  0x92   : > { %445 = vst [vmem:[#allocation2 + $0x8] sm:$0xf0] %v437_v44  ;;  %446 = vst [vmem:[#allocation2 + $0x10] sm:$0xf0] %v438_v45  ;;  %v530_v52 = vmul.f32 %v519_v37, %v502_v50  ;;  %v531_v53 = vmul.f32 %v523_v41, %v501_v49  ;;  %v575_v39 = vrot.slane %v1611_v24, %v1831_v15 }
  0x93   : > { %v536_v55 = vrot.slane %v528_v51, 4  ;;  %v350_v58 = vpop.permute.xlu1 %349  ;;  %v579_v40 = vrot.slane %v1611_v24, %v1833_v16 }
  0x94   : > { %v538_v56 = vrot.slane %v530_v52, 4  ;;  %v539_v57 = vrot.slane %v531_v53, 4  ;;  %v348_v59 = vpop.permute.xlu0 %347 }
  0x95   : > { %v360_v60 = vsel %vm357_vm2, %v348_v59, %v350_v58  ;;  %544 = vst [vmem:[#allocation2 + $0x20] sm:$0xf0] %v536_v55 }
  0x96   : > { %546 = vst [vmem:[#allocation2 + $0x30] sm:$0xf0] %v538_v56  ;;  %547 = vst [vmem:[#allocation2 + $0x38] sm:$0xf0] %v539_v57  ;;  %v385_v61 = vmul.f32 %v371_v54, %v360_v60  ;;  %v671_v54 = vrot.slane %v1613_v43, %v1824_v10 }
  0x97   : > { %v354_v2 = vpop.permute.xlu1 %353 }
  0x98   : > { %389 = vst [vmem:[#allocation2 + $0x8] sm:$0xf] %v385_v61  ;;  %v352_v3 = vpop.permute.xlu0 %351  ;;  %v361_v5 = vsel %vm357_vm2, %v354_v2, %v348_v59 }
  0x99   : > { %v358_v6 = vsel %vm357_vm2, %v352_v3, %v354_v2  ;;  %v359_v7 = vsel %vm357_vm2, %v350_v58, %v352_v3  ;;  %v384_v8 = vmul.f32 %v367_v62, %v361_v5 }
  0x9a   : > { %v386_v12 = vmul.f32 %v375_v63, %v359_v7  ;;  %v387_v13 = vmul.f32 %v379_v0, %v358_v6 }
  0x9b   : > { %388 = vst [vmem:[#allocation2] sm:$0xf] %v384_v8  ;;  %v451_v17 = vpop.permute.xlu1 %450  ;;  %v683_v8 = vrot.slane %v1613_v43, %v1826_v11 }
  0x9c   : > { %390 = vst [vmem:[#allocation2 + $0x10] sm:$0xf] %v386_v12  ;;  %391 = vst [vmem:[#allocation2 + $0x18] sm:$0xf] %v387_v13  ;;  %v449_v18 = vpop.permute.xlu0 %448  ;;  %v675_v12 = vrot.slane %v1613_v43, %v1831_v15  ;;  %v679_v13 = vrot.slane %v1613_v43, %v1833_v16 }
  0x9d   : > { %v459_v19 = vsel %vm456_vm3, %v449_v18, %v451_v17 }
  0x9e   : > { %v485_v20 = vmul.f32 %v471_v14, %v459_v19  ;;  %v1612_v14 = vld [vmem:[%s2177_s0 + $0x6] ss:$8 sm:$0xf] }
  0x9f   : > { %v455_v25 = vpop.permute.xlu1 %454  ;;  %v754_v41 = vld [vmem:[#allocation2 + $0x8] sm:$0xff] }
  0xa0   : > { %489 = vst [vmem:[#allocation2 + $0x28] sm:$0xf] %v485_v20  ;;  %v453_v26 = vpop.permute.xlu0 %452  ;;  %v460_v27 = vsel %vm456_vm3, %v455_v25, %v449_v18 }
  0xa1   : > { %v457_v28 = vsel %vm456_vm3, %v453_v26, %v455_v25  ;;  %v458_v29 = vsel %vm456_vm3, %v451_v17, %v453_v26  ;;  %v484_v30 = vmul.f32 %v467_v21, %v460_v27  ;;  %v627_v26 = vrot.slane %v1612_v14, %v1824_v10 }
  0xa2   : > { %v486_v31 = vmul.f32 %v475_v22, %v458_v29  ;;  %v487_v32 = vmul.f32 %v479_v23, %v457_v28  ;;  %v753_v55 = vld [vmem:[#allocation2] sm:$0xff] }
  0xa3   : > { %488 = vst [vmem:[#allocation2 + $0x20] sm:$0xf] %v484_v30  ;;  %v555_v34 = vpop.permute.xlu1 %554  ;;  %v756_v1 = vld [vmem:[#allocation2 + $0x18] sm:$0xff]  ;;  %v755_v2 = vld [vmem:[#allocation2 + $0x10] sm:$0xff] }
  0xa4   : > { %490 = vst [vmem:[#allocation2 + $0x30] sm:$0xf] %v486_v31  ;;  %491 = vst [vmem:[#allocation2 + $0x38] sm:$0xf] %v487_v32  ;;  %v553_v35 = vpop.permute.xlu0 %552 }
  0xa5   : > { %v563_v36 = vsel %vm560_vm4, %v553_v35, %v555_v34 }
  0xa6   : > { %v588_v37 = vmul.f32 %v571_v33, %v563_v36  ;;  %v635_v36 = vrot.slane %v1612_v14, %v1833_v16 }
  0xa7   : > { %v758_v42 = vld [vmem:[#allocation2 + $0x28] sm:$0xff]  ;;  %v559_v45 = vpop.permute.xlu1 %558 }
  0xa8   : > { %v596_v44 = vrot.slane %v588_v37, 4  ;;  %v557_v46 = vpop.permute.xlu0 %556  ;;  %v1636_v47 = vpack.c.bf16 %v758_v42, %v754_v41  ;;  %v564_v48 = vsel %vm560_vm4, %v559_v45, %v553_v35  ;;  %v631_v35 = vrot.slane %v1612_v14, %v1831_v15  ;;  %v1614_v37 = vld [vmem:[%s2177_s0 + $0x20] ss:$8 sm:$0xf] }
  0xa9   : > { %v561_v49 = vsel %vm560_vm4, %v557_v46, %v559_v45  ;;  %v562_v50 = vsel %vm560_vm4, %v555_v34, %v557_v46  ;;  %v591_v51 = vmul.f32 %v583_v38, %v564_v48  ;;  %v639_v34 = vrot.slane %v1612_v14, %v1826_v11  ;;  %v752_v14 = vld [vmem:[%s2180_s3] sm:$0xff] }
  0xaa   : > { %604 = vst [vmem:[#allocation2 + $0x40] sm:$0xf0] %v596_v44  ;;  %v589_v52 = vmul.f32 %v575_v39, %v562_v50  ;;  %v590_v53 = vmul.f32 %v579_v40, %v561_v49  ;;  %1637 = vmatprep.subr.bf16.mxu0 %v1636_v47  ;;  %v757_v56 = vld [vmem:[#allocation2 + $0x20] sm:$0xff]  ;;  %v727_v46 = vrot.slane %v1614_v37, %v1824_v10 }
  0xab   : > { %v760_v57 = vld [vmem:[#allocation2 + $0x38] sm:$0xff]  ;;  %v759_v58 = vld [vmem:[#allocation2 + $0x30] sm:$0xff]  ;;  %v599_v59 = vrot.slane %v591_v51, 4  ;;  %v655_v62 = vpop.permute.xlu1 %654  ;;  %v1638_v0 = vpack.c.bf16 %v757_v56, %v753_v55  ;;  %v739_v51 = vrot.slane %v1614_v37, %v1826_v11 }
  0xac   : > { %v597_v60 = vrot.slane %v589_v52, 4  ;;  %v598_v61 = vrot.slane %v590_v53, 4  ;;  %v653_v63 = vpop.permute.xlu0 %652  ;;  %v1644_v5 = vpack.c.bf16 %v760_v57, %v756_v1  ;;  %v1646_v6 = vpack.c.bf16 %v759_v58, %v755_v2 }
  0xad   : > { %v663_v3 = vsel %vm660_vm5, %v653_v63, %v655_v62  ;;  %607 = vst [vmem:[#allocation2 + $0x58] sm:$0xf0] %v599_v59  ;;  %1639 = vmatpush1.bf16.msra.mxu0 %v1638_v0  ;;  %v731_v52 = vrot.slane %v1614_v37, %v1831_v15  ;;  %v735_v53 = vrot.slane %v1614_v37, %v1833_v16  ;;  %v1327_v37 = vld [vmem:[%s2183_s6] sm:$0xff] }
  0xae   : > { %605 = vst [vmem:[#allocation2 + $0x48] sm:$0xf0] %v597_v60  ;;  %606 = vst [vmem:[#allocation2 + $0x50] sm:$0xf0] %v598_v61  ;;  %v688_v7 = vmul.f32 %v671_v54, %v663_v3  ;;  %1645 = vmatprep.subr.bf16.mxu1 %v1644_v5 }
  0xaf   : > { %1647 = vmatpush1.bf16.msra.mxu1 %v1646_v6  ;;  %v659_v18 = vpop.permute.xlu1 %658 }
  0xb0   : > { %v696_v17 = vrot.slane %v688_v7, 4  ;;  %v657_v19 = vpop.permute.xlu0 %656  ;;  %v664_v20 = vsel %vm660_vm5, %v659_v18, %v653_v63 }
  0xb1   : > { %v661_v21 = vsel %vm660_vm5, %v657_v19, %v659_v18  ;;  %v662_v22 = vsel %vm660_vm5, %v655_v62, %v657_v19  ;;  %v691_v23 = vmul.f32 %v683_v8, %v664_v20  ;;  %v761_v8 = vld [vmem:[#allocation2 + $0x40] sm:$0xff] }
  0xb2   : > { %704 = vst [vmem:[#allocation2 + $0x60] sm:$0xf0] %v696_v17  ;;  %v689_v24 = vmul.f32 %v675_v12, %v662_v22  ;;  %v690_v25 = vmul.f32 %v679_v13, %v661_v21 }
  0xb3   : > { %v699_v27 = vrot.slane %v691_v23, 4  ;;  %v611_v30 = vpop.permute.xlu1 %610 }
  0xb4   : > { %v697_v28 = vrot.slane %v689_v24, 4  ;;  %v698_v29 = vrot.slane %v690_v25, 4  ;;  %v609_v31 = vpop.permute.xlu0 %608  ;;  %v764_v63 = vld [vmem:[#allocation2 + $0x58] sm:$0xff] }
  0xb5   : > { %v619_v32 = vsel %vm616_vm6, %v609_v31, %v611_v30  ;;  %707 = vst [vmem:[#allocation2 + $0x78] sm:$0xf0] %v699_v27  ;;  %v762_v59 = vld [vmem:[#allocation2 + $0x48] sm:$0xff]  ;;  %v763_v1 = vld [vmem:[#allocation2 + $0x50] sm:$0xff] }
  0xb6   : > { %705 = vst [vmem:[#allocation2 + $0x68] sm:$0xf0] %v697_v28  ;;  %706 = vst [vmem:[#allocation2 + $0x70] sm:$0xf0] %v698_v29  ;;  %v644_v33 = vmul.f32 %v627_v26, %v619_v32 }
  0xb7   : > { %v615_v38 = vpop.permute.xlu1 %614 }
  0xb8   : > { %648 = vst [vmem:[#allocation2 + $0x60] sm:$0xf] %v644_v33  ;;  %v613_v39 = vpop.permute.xlu0 %612  ;;  %v620_v40 = vsel %vm616_vm6, %v615_v38, %v609_v31 }
  0xb9   : > { %v617_v41 = vsel %vm616_vm6, %v613_v39, %v615_v38  ;;  %v618_v42 = vsel %vm616_vm6, %v611_v30, %v613_v39  ;;  %v647_v43 = vmul.f32 %v639_v34, %v620_v40 }
  0xba   : > { %v645_v44 = vmul.f32 %v631_v35, %v618_v42  ;;  %v646_v45 = vmul.f32 %v635_v36, %v617_v41  ;;  %v962_v42 = vld [vmem:[%s2177_s0] ss:$8 sm:$0xf] }
  0xbb   : > { %651 = vst [vmem:[#allocation2 + $0x78] sm:$0xf] %v647_v43  ;;  %v711_v47 = vpop.permute.xlu1 %710  ;;  %v1621_v43 = vld [vmem:[%s2177_s0 + $0x1] ss:$8 sm:$0xf] }
  0xbc   : > { %649 = vst [vmem:[#allocation2 + $0x68] sm:$0xf] %v645_v44  ;;  %650 = vst [vmem:[#allocation2 + $0x70] sm:$0xf] %v646_v45  ;;  %v709_v48 = vpop.permute.xlu0 %708 }
  0xbd   : > { %v719_v49 = vsel %vm716_vm7, %v709_v48, %v711_v47 }
  0xbe   : > { %v744_v50 = vmul.f32 %v727_v46, %v719_v49  ;;  %v971_v46 = vrot.slane %v962_v42, %v1831_v15  ;;  %v967_v49 = vrot.slane %v962_v42, %v1824_v10 }
  0xbf   : > { %v715_v54 = vpop.permute.xlu1 %714  ;;  %v765_v0 = vld [vmem:[#allocation2 + $0x60] sm:$0xff] }
  0xc0   : > { %748 = vst [vmem:[#allocation2 + $0x80] sm:$0xf] %v744_v50  ;;  %v713_v55 = vpop.permute.xlu0 %712  ;;  %v720_v56 = vsel %vm716_vm7, %v715_v54, %v709_v48  ;;  %v1642_v13 = vpack.c.bf16 %v765_v0, %v761_v8 }
  0xc1   : > { %v717_v57 = vsel %vm716_vm7, %v713_v55, %v715_v54  ;;  %v718_v58 = vsel %vm716_vm7, %v711_v47, %v713_v55  ;;  %v747_v60 = vmul.f32 %v739_v51, %v720_v56  ;;  %v1013_v47 = vrot.slane %v1621_v43, %v1831_v15 }
  0xc2   : > { %v745_v61 = vmul.f32 %v731_v52, %v718_v58  ;;  %v746_v62 = vmul.f32 %v735_v53, %v717_v57  ;;  %v768_v3 = vld [vmem:[#allocation2 + $0x78] sm:$0xff]  ;;  %v979_v52 = vrot.slane %v962_v42, %v1826_v11  ;;  %v1017_v53 = vrot.slane %v1621_v43, %v1833_v16 }
  0xc3   : > { %v766_v2 = vld [vmem:[#allocation2 + $0x68] sm:$0xff]  ;;  %v767_v5 = vld [vmem:[#allocation2 + $0x70] sm:$0xff]  ;;  %751 = vst [vmem:[#allocation2 + $0x98] sm:$0xf] %v747_v60  ;;  %v1648_v7 = vpack.c.bf16 %v768_v3, %v764_v63  ;;  %v1009_v55 = vrot.slane %v1621_v43, %v1824_v10  ;;  %v975_v60 = vrot.slane %v962_v42, %v1833_v16 }
  0xc4   : > { %749 = vst [vmem:[#allocation2 + $0x88] sm:$0xf] %v745_v61  ;;  %750 = vst [vmem:[#allocation2 + $0x90] sm:$0xf] %v746_v62  ;;  %v1640_v6 = vpack.c.bf16 %v766_v2, %v762_v59  ;;  %v1650_v12 = vpack.c.bf16 %v767_v5, %v763_v1  ;;  %v1021_v59 = vrot.slane %v1621_v43, %v1826_v11 }
  0xc5   : > { %1649 = vmatprep.subr.bf16.mxu1 %v1648_v7 }
  0xc6   : > { %1641 = vmatprep.subr.bf16.mxu0 %v1640_v6  ;;  %1651 = vmatpush1.bf16.msra.mxu1 %v1650_v12 }
  0xc7   : > { %1643 = vmatpush1.bf16.msra.mxu0 %v1642_v13  ;;  %v769_v20 = vld [vmem:[#allocation2 + $0x80] sm:$0xf] }
  0xca   : > { %v772_v18 = vld [vmem:[#allocation2 + $0x98] sm:$0xf] }
  0xcb   : > { %v770_v17 = vld [vmem:[#allocation2 + $0x88] sm:$0xf]  ;;  %v771_v19 = vld [vmem:[#allocation2 + $0x90] sm:$0xf]  ;;  %1618 = vmatprep.subr.msk.mxu1 %vm783_vm8, %v772_v18 }
  0xcc   : > { %1615 = vmatprep.subr.msk.mxu0 %vm783_vm8, %v770_v17  ;;  %1619 = vmatpush1.msk.msra.mxu1 %vm783_vm8, %v771_v19 }
  0xcd   : > { %1616 = vmatpush1.msk.msra.mxu0 %vm783_vm8, %v769_v20  ;;  %1620 = vmatmul.mubr.msk.f32.vlgmr.msra.gmra.mrb[0].mxu1 %vm779_vm9, %v752_v14 }
  0xce   : > { %1617 = vmatmul.mubr.msk.f32.vlgmr.msra.gmra.mrb[0].mxu0 %vm779_vm9, %v752_v14  ;;  %1472 = vmatprep.mubr.f32.mxu1 %v1721_v4 }
  0xcf   : > { %1401 = vmatprep.mubr.f32.mxu0 %v1721_v4 }
  0xd1   : > { %v777_v21 = vpop.permute.xlu0 %776 }
 0x1a0   : > { %v933_v22 = vpop.f32.mrb[0].mxu1 }
 0x1a1   : > { %v862_v23 = vpop.f32.mrb[0].mxu0  ;;  %v934_v24 = vadd.f32 %v933_v22, %v777_v21  ;;  %v935_v27 = vpop.f32.mrb[1].mxu1  ;;  %v1622_v22 = vld [vmem:[%s2177_s0 + $0x2] ss:$8 sm:$0xf] }
 0x1a2   : > { %v863_v25 = vadd.f32 %v862_v23, %v777_v21  ;;  %v864_v26 = vpop.f32.mrb[1].mxu0  ;;  %v936_v34 = vadd.f32 %v935_v27, %v777_v21  ;;  %v1623_v23 = vld [vmem:[%s2177_s0 + $0x3] ss:$8 sm:$0xf] }
 0x1a3   : > { %v865_v28 = vadd.f32 %v864_v26, %v777_v21  ;;  %vm940_vm10 = vcmp.ge.f32.partialorder %v934_v24, 0.0  ;;  %v944_v29 = vmul.f32 0.01, %v934_v24  ;;  %v1055_v26 = vrot.slane %v1622_v22, %v1831_v15 }
 0x1a4   : > { %vm938_vm11 = vcmp.ge.f32.partialorder %v863_v25, 0.0  ;;  %v942_v30 = vmul.f32 0.01, %v863_v25  ;;  %v945_v35 = vmul.f32 0.01, %v936_v34  ;;  %vm941_vm13 = vcmp.ge.f32.partialorder %v936_v34, 0.0 }
 0x1a5   : > { %v1965_v31 = vsel %vm940_vm10, %v934_v24, %v944_v29  ;;  %v943_v33 = vmul.f32 0.01, %v865_v28  ;;  %vm939_vm12 = vcmp.ge.f32.partialorder %v865_v28, 0.0  ;;  %v1097_v27 = vrot.slane %v1623_v23, %v1831_v15 }
 0x1a6   : > { %v1967_v32 = vsel %vm938_vm11, %v863_v25, %v942_v30  ;;  %954 = vrot.lane.b32.xlu0 %v1965_v31, %s1715_s16  ;;  %v1979_v36 = vsel %vm941_vm13, %v936_v34, %v945_v35  ;;  %v1051_v29 = vrot.slane %v1622_v22, %v1824_v10  ;;  %v1063_v34 = vrot.slane %v1622_v22, %v1826_v11 }
 0x1a7   : > { %950 = vrot.lane.b32.xlu1 %v1967_v32, %s1715_s16  ;;  %v1973_v4 = vsel %vm939_vm12, %v865_v28, %v943_v33  ;;  %v1101_v35 = vrot.slane %v1623_v23, %v1833_v16  ;;  %v1105_v43 = vrot.slane %v1623_v23, %v1826_v11 }
 0x1aa   : > { %992 = vrot.lane.b32.xlu0 %v1967_v32, %s1713_s14 }
 0x1ab   : > { %952 = vrot.lane.b32.xlu1 %v1973_v4, %s1715_s16 }
 0x1ae   : > { %996 = vrot.lane.b32.xlu0 %v1965_v31, %s1713_s14 }
 0x1af   : > { %956 = vrot.lane.b32.xlu1 %v1979_v36, %s1715_s16 }
 0x1b2   : > { %1034 = vrot.lane.b32.xlu0 %v1967_v32, %s1716_s17 }
 0x1b3   : > { %994 = vrot.lane.b32.xlu1 %v1973_v4, %s1713_s14 }
 0x1b6   : > { %1038 = vrot.lane.b32.xlu0 %v1965_v31, %s1716_s17 }
 0x1b7   : > { %998 = vrot.lane.b32.xlu1 %v1979_v36, %s1713_s14  ;;  %s1634_s14 = sshll.u32 %s2187_s28, 4 }
 0x1ba   : > { %1076 = vrot.lane.b32.xlu0 %v1967_v32, %s1714_s15 }
 0x1bb   : > { %1036 = vrot.lane.b32.xlu1 %v1973_v4, %s1716_s17 }
 0x1be   : > { %1080 = vrot.lane.b32.xlu0 %v1965_v31, %s1714_s15 }
 0x1bf   : > { %1040 = vrot.lane.b32.xlu1 %v1979_v36, %s1716_s17  ;;  %s333_s17 = scalar_lea.vmem %s2184_s7, %s1634_s14 }
 0x1c2   : > { %1122 = vrot.lane.b32.xlu0 %v1967_v32, %s1717_s18 }
 0x1c3   : > { %1078 = vrot.lane.b32.xlu1 %v1973_v4, %s1714_s15 }
 0x1c6   : > { %1126 = vrot.lane.b32.xlu0 %v1965_v31, %s1717_s18 }
 0x1c7   : > { %1082 = vrot.lane.b32.xlu1 %v1979_v36, %s1714_s15 }
 0x1ca   : > { %1164 = vrot.lane.b32.xlu0 %v1967_v32, %s1719_s20 }
 0x1cb   : > { %1124 = vrot.lane.b32.xlu1 %v1973_v4, %s1717_s18 }
 0x1ce   : > { %1168 = vrot.lane.b32.xlu0 %v1965_v31, %s1719_s20 }
 0x1cf   : > { %1128 = vrot.lane.b32.xlu1 %v1979_v36, %s1717_s18 }
 0x1d2   : > { %1206 = vrot.lane.b32.xlu0 %v1967_v32, %s1718_s19 }
 0x1d3   : > { %1166 = vrot.lane.b32.xlu1 %v1973_v4, %s1719_s20 }
 0x1d6   : > { %1210 = vrot.lane.b32.xlu0 %v1965_v31, %s1718_s19 }
 0x1d7   : > { %1170 = vrot.lane.b32.xlu1 %v1979_v36, %s1719_s20 }
 0x1da   : > { %1248 = vrot.lane.b32.xlu0 %v1967_v32, %s1720_s21 }
 0x1db   : > { %1208 = vrot.lane.b32.xlu1 %v1973_v4, %s1718_s19 }
 0x1de   : > { %1252 = vrot.lane.b32.xlu0 %v1965_v31, %s1720_s21 }
 0x1df   : > { %1212 = vrot.lane.b32.xlu1 %v1979_v36, %s1718_s19  ;;  %s338_s19 = scalar_lea.vmem %s2185_s8, %s1634_s14 }
 0x1e2   : > { %1330 = vperm.xlu0 %1702, %v1327_v37  }
 0x1e3   : > { %1250 = vrot.lane.b32.xlu1 %v1973_v4, %s1720_s21 }
 0x1e7   : > { %1254 = vrot.lane.b32.xlu1 %v1979_v36, %s1720_s21 }
 0x218   : > { %v955_v38 = vpop.permute.xlu0 %954 }
 0x219   : > { %v951_v39 = vpop.permute.xlu1 %950 }
 0x21c   : > { %v993_v40 = vpop.permute.xlu0 %992 }
 0x21d   : > { %v953_v41 = vpop.permute.xlu1 %952 }
 0x21e   : > { %v960_v48 = vsel %vm357_vm2, %v951_v39, %v953_v41  ;;  %v959_v63 = vsel %vm357_vm2, %v953_v41, %v955_v38 }
 0x21f   : > { %v985_v56 = vmul.f32 %v971_v46, %v960_v48  ;;  %v986_v14 = vmul.f32 %v975_v60, %v959_v63 }
 0x220   : > { %v997_v44 = vpop.permute.xlu0 %996 }
 0x221   : > { %v957_v45 = vpop.permute.xlu1 %956 }
 0x222   : > { %v958_v61 = vsel %vm357_vm2, %v955_v38, %v957_v45  ;;  %v961_v62 = vsel %vm357_vm2, %v957_v45, %v951_v39  ;;  %v1093_v38 = vrot.slane %v1623_v23, %v1824_v10  ;;  %v1624_v39 = vld [vmem:[%s2177_s0 + $0x5] ss:$8 sm:$0xf] }
 0x223   : > { %v984_v7 = vmul.f32 %v967_v49, %v961_v62  ;;  %v987_v8 = vmul.f32 %v979_v52, %v958_v61  ;;  %v1139_v52 = vrot.slane %v1624_v39, %v1824_v10 }
 0x224   : > { %v1035_v50 = vpop.permute.xlu0 %1034 }
 0x225   : > { %v995_v51 = vpop.permute.xlu1 %994 }
 0x226   : > { %v1002_v54 = vsel %vm400_vm0, %v993_v40, %v995_v51  ;;  %v1001_v57 = vsel %vm400_vm0, %v995_v51, %v997_v44 }
 0x227   : > { %v1027_v58 = vmul.f32 %v1013_v47, %v1002_v54  ;;  %v1028_v3 = vmul.f32 %v1017_v53, %v1001_v57 }
 0x228   : > { %v1039_v0 = vpop.permute.xlu0 %1038 }
 0x229   : > { %v999_v1 = vpop.permute.xlu1 %998  ;;  %v1652_v2 = vpack.c.bf16 %v1027_v58, %v985_v56  ;;  %v1670_v21 = vpack.c.bf16 %v1028_v3, %v986_v14  ;;  %v1143_v56 = vrot.slane %v1624_v39, %v1831_v15 }
 0x22a   : > { %v1000_v5 = vsel %vm400_vm0, %v997_v44, %v999_v1  ;;  %v1003_v6 = vsel %vm400_vm0, %v999_v1, %v993_v40  ;;  %v1059_v44 = vrot.slane %v1622_v22, %v1833_v16 }
 0x22b   : > { %v1026_v12 = vmul.f32 %v1009_v55, %v1003_v6  ;;  %v1029_v13 = vmul.f32 %v1021_v59, %v1000_v5  ;;  %1653 = vmatprep.subr.bf16.mxu0 %v1652_v2  ;;  %v1147_v5 = vrot.slane %v1624_v39, %v1833_v16 }
 0x22c   : > { %v1077_v18 = vpop.permute.xlu0 %1076 }
 0x22d   : > { %v1654_v17 = vpack.c.bf16 %v1026_v12, %v984_v7  ;;  %v1037_v19 = vpop.permute.xlu1 %1036  ;;  %v1668_v20 = vpack.c.bf16 %v1029_v13, %v987_v8  ;;  %v1151_v8 = vrot.slane %v1624_v39, %v1826_v11 }
 0x22e   : > { %v1044_v28 = vsel %vm456_vm3, %v1035_v50, %v1037_v19  ;;  %v1043_v47 = vsel %vm456_vm3, %v1037_v19, %v1039_v0 }
 0x22f   : > { %1655 = vmatpush1.bf16.msra.mxu0 %v1654_v17  ;;  %1669 = vmatprep.subr.bf16.mxu1 %v1668_v20  ;;  %v1069_v40 = vmul.f32 %v1055_v26, %v1044_v28  ;;  %v1070_v60 = vmul.f32 %v1059_v44, %v1043_v47  ;;  %v1627_v47 = vld [vmem:[%s2177_s0 + $0x20] ss:$8 sm:$0xf] }
 0x230   : > { %1671 = vmatpush1.bf16.msra.mxu1 %v1670_v21  ;;  %v1081_v24 = vpop.permute.xlu0 %1080 }
 0x231   : > { %v1041_v25 = vpop.permute.xlu1 %1040 }
 0x232   : > { %v1042_v45 = vsel %vm456_vm3, %v1039_v0, %v1041_v25  ;;  %v1045_v46 = vsel %vm456_vm3, %v1041_v25, %v1035_v50  ;;  %v1626_v25 = vld [vmem:[%s2177_s0 + $0x7] ss:$8 sm:$0xf] }
 0x233   : > { %v1068_v57 = vmul.f32 %v1051_v29, %v1045_v46  ;;  %v1071_v58 = vmul.f32 %v1063_v34, %v1042_v45  ;;  %v1223_v29 = vrot.slane %v1626_v25, %v1824_v10 }
 0x234   : > { %v1123_v30 = vpop.permute.xlu0 %1122 }
 0x235   : > { %v1079_v33 = vpop.permute.xlu1 %1078 }
 0x236   : > { %v1086_v37 = vsel %vm500_vm1, %v1077_v18, %v1079_v33  ;;  %v1085_v41 = vsel %vm500_vm1, %v1079_v33, %v1081_v24 }
 0x237   : > { %v1111_v42 = vmul.f32 %v1097_v27, %v1086_v37  ;;  %v1112_v53 = vmul.f32 %v1101_v35, %v1085_v41  ;;  %v1235_v41 = vrot.slane %v1626_v25, %v1826_v11 }
 0x238   : > { %v1127_v48 = vpop.permute.xlu0 %1126 }
 0x239   : > { %v1083_v49 = vpop.permute.xlu1 %1082  ;;  %v1656_v51 = vpack.c.bf16 %v1111_v42, %v1069_v40  ;;  %v1674_v1 = vpack.c.bf16 %v1112_v53, %v1070_v60  ;;  %v1231_v40 = vrot.slane %v1626_v25, %v1833_v16 }
 0x23a   : > { %v1084_v54 = vsel %vm500_vm1, %v1081_v24, %v1083_v49  ;;  %v1087_v55 = vsel %vm500_vm1, %v1083_v49, %v1077_v18 }
 0x23b   : > { %v1110_v50 = vmul.f32 %v1093_v38, %v1087_v55  ;;  %v1113_v59 = vmul.f32 %v1105_v43, %v1084_v54  ;;  %1657 = vmatprep.subr.bf16.mxu0 %v1656_v51 }
 0x23c   : > { %v1165_v62 = vpop.permute.xlu0 %1164 }
 0x23d   : > { %v1658_v61 = vpack.c.bf16 %v1110_v50, %v1068_v57  ;;  %v1125_v63 = vpop.permute.xlu1 %1124  ;;  %v1672_v0 = vpack.c.bf16 %v1113_v59, %v1071_v58  ;;  %v1269_v57 = vrot.slane %v1627_v47, %v1831_v15 }
 0x23e   : > { %v1131_v2 = vsel %vm560_vm4, %v1125_v63, %v1127_v48  ;;  %v1132_v3 = vsel %vm560_vm4, %v1123_v30, %v1125_v63 }
 0x23f   : > { %v1156_v6 = vmul.f32 %v1139_v52, %v1132_v3  ;;  %v1157_v7 = vmul.f32 %v1143_v56, %v1131_v2  ;;  %1659 = vmatpush1.bf16.msra.mxu0 %v1658_v61  ;;  %1673 = vmatprep.subr.bf16.mxu1 %v1672_v0  ;;  %v1265_v56 = vrot.slane %v1627_v47, %v1824_v10 }
 0x240   : > { %1675 = vmatpush1.bf16.msra.mxu1 %v1674_v1  ;;  %v1169_v13 = vpop.permute.xlu0 %1168 }
 0x241   : > { %v1662_v12 = vpack.c.bf16 %v1156_v6, %v1967_v32  ;;  %v1129_v14 = vpop.permute.xlu1 %1128  ;;  %v1660_v17 = vpack.c.bf16 %v1157_v7, %v1973_v4  ;;  %v1625_v4 = vld [vmem:[%s2177_s0 + $0x6] ss:$8 sm:$0xf] }
 0x242   : > { %v1130_v18 = vsel %vm560_vm4, %v1127_v48, %v1129_v14  ;;  %v1133_v19 = vsel %vm560_vm4, %v1129_v14, %v1123_v30  ;;  %v1181_v28 = vrot.slane %v1625_v4, %v1824_v10  ;;  %v1189_v34 = vrot.slane %v1625_v4, %v1833_v16  ;;  %v1290_v6 = vld [vmem:[%s2182_s5] sm:$0xff] }
 0x243   : > { %v1158_v20 = vmul.f32 %v1147_v5, %v1130_v18  ;;  %v1159_v21 = vmul.f32 %v1151_v8, %v1133_v19  ;;  %1661 = vmatprep.subr.bf16.mxu0 %v1660_v17  ;;  %v1193_v35 = vrot.slane %v1625_v4, %v1826_v11  ;;  %v1277_v5 = vrot.slane %v1627_v47, %v1826_v11 }
 0x244   : > { %1663 = vmatpush1.bf16.msra.mxu0 %v1662_v12  ;;  %v1207_v23 = vpop.permute.xlu0 %1206 }
 0x245   : > { %v1678_v22 = vpack.c.bf16 %v1158_v20, %v1965_v31  ;;  %v1167_v24 = vpop.permute.xlu1 %1166  ;;  %v1676_v32 = vpack.c.bf16 %v1159_v21, %v1979_v36  ;;  %v1185_v31 = vrot.slane %v1625_v4, %v1831_v15  ;;  %v1227_v36 = vrot.slane %v1626_v25, %v1831_v15 }
 0x246   : > { %v1173_v30 = vsel %vm616_vm6, %v1167_v24, %v1169_v13  ;;  %v1174_v33 = vsel %vm616_vm6, %v1165_v62, %v1167_v24  ;;  %v1273_v15 = vrot.slane %v1627_v47, %v1833_v16 }
 0x247   : > { %1677 = vmatprep.subr.bf16.mxu1 %v1676_v32  ;;  %v1198_v42 = vmul.f32 %v1181_v28, %v1174_v33  ;;  %v1199_v43 = vmul.f32 %v1185_v31, %v1173_v30 }
 0x248   : > { %1679 = vmatpush1.bf16.msra.mxu1 %v1678_v22  ;;  %v1211_v26 = vpop.permute.xlu0 %1210 }
 0x249   : > { %v1171_v27 = vpop.permute.xlu1 %1170 }
 0x24a   : > { %v1172_v48 = vsel %vm616_vm6, %v1169_v13, %v1171_v27  ;;  %v1175_v49 = vsel %vm616_vm6, %v1171_v27, %v1165_v62 }
 0x24b   : > { %v1200_v58 = vmul.f32 %v1189_v34, %v1172_v48  ;;  %v1201_v50 = vmul.f32 %v1193_v35, %v1175_v49 }
 0x24c   : > { %v1249_v44 = vpop.permute.xlu0 %1248 }
 0x24d   : > { %v1209_v37 = vpop.permute.xlu1 %1208 }
 0x24e   : > { %v1215_v38 = vsel %vm660_vm5, %v1209_v37, %v1211_v26  ;;  %v1216_v39 = vsel %vm660_vm5, %v1207_v23, %v1209_v37 }
 0x24f   : > { %v1240_v45 = vmul.f32 %v1223_v29, %v1216_v39  ;;  %v1241_v46 = vmul.f32 %v1227_v36, %v1215_v38 }
 0x250   : > { %v1253_v61 = vpop.permute.xlu0 %1252 }
 0x251   : > { %v1666_v51 = vpack.c.bf16 %v1240_v45, %v1198_v42  ;;  %v1213_v52 = vpop.permute.xlu1 %1212  ;;  %v1664_v53 = vpack.c.bf16 %v1241_v46, %v1199_v43 }
 0x252   : > { %v1214_v54 = vsel %vm660_vm5, %v1211_v26, %v1213_v52  ;;  %v1217_v55 = vsel %vm660_vm5, %v1213_v52, %v1207_v23 }
 0x253   : > { %v1242_v59 = vmul.f32 %v1231_v40, %v1214_v54  ;;  %v1243_v60 = vmul.f32 %v1235_v41, %v1217_v55  ;;  %1665 = vmatprep.subr.bf16.mxu0 %v1664_v53 }
 0x254   : > { %1667 = vmatpush1.bf16.msra.mxu0 %v1666_v51 }
 0x255   : > { %v1682_v62 = vpack.c.bf16 %v1242_v59, %v1200_v58  ;;  %v1251_v63 = vpop.permute.xlu1 %1250  ;;  %v1680_v0 = vpack.c.bf16 %v1243_v60, %v1201_v50 }
 0x256   : > { %v1257_v1 = vsel %vm716_vm7, %v1251_v63, %v1253_v61  ;;  %v1258_v2 = vsel %vm716_vm7, %v1249_v44, %v1251_v63 }
 0x257   : > { %v1282_v3 = vmul.f32 %v1265_v56, %v1258_v2  ;;  %v1283_v10 = vmul.f32 %v1269_v57, %v1257_v1  ;;  %1681 = vmatprep.subr.bf16.mxu1 %v1680_v0 }
 0x258   : > { %1683 = vmatpush1.bf16.msra.mxu1 %v1682_v62 }
 0x259   : > { %1353 = vmatprep.subr.mxu0 %v1283_v10  ;;  %v1255_v7 = vpop.permute.xlu1 %1254 }
 0x25a   : > { %v1256_v8 = vsel %vm716_vm7, %v1253_v61, %v1255_v7  ;;  %v1259_v12 = vsel %vm716_vm7, %v1255_v7, %v1249_v44  ;;  %1354 = vmatpush1.msra.mxu0 %v1282_v3 }
 0x25b   : > { %v1284_v13 = vmul.f32 %v1273_v15, %v1256_v8  ;;  %v1285_v16 = vmul.f32 %v1277_v5, %v1259_v12  ;;  %1628 = vmatmul.mubr.msk.f32.vlgmr.msra.gmra.mrb[2].mxu0 %vm1333_vm14, %v1290_v6 }
 0x25d   : > { %1424 = vmatprep.subr.mxu1 %v1285_v16 }
 0x25e   : > { %1425 = vmatpush1.msra.mxu1 %v1284_v13 }
 0x25f   : > { %1629 = vmatmul.mubr.msk.f32.vlgmr.msra.gmra.mrb[2].mxu1 %vm1333_vm14, %v1290_v6 }
 0x261   : > { %v1331_v11 = vpop.permute.xlu0 %1330 }
 0x32e   : > { %v1403_v14 = vpop.f32.mrb[2].mxu0 }
 0x32f   : > { %v1404_v17 = vadd.f32 %v1403_v14, %v1331_v11  ;;  %v1405_v18 = vpop.f32.mrb[3].mxu0 }
 0x330   : > { %v1406_v19 = vadd.f32 %v1405_v18, %v1331_v11 }
 0x331   : > { %vm1479_vm15 = vcmp.ge.f32.partialorder %v1404_v17, 0.0  ;;  %v1483_v9 = vmul.f32 0.01, %v1404_v17 }
 0x332   : > { %vm1480_vm0 = vcmp.ge.f32.partialorder %v1406_v19, 0.0  ;;  %v1484_v20 = vmul.f32 0.01, %v1406_v19  ;;  %v1474_v21 = vpop.f32.mrb[2].mxu1 }
 0x333   : > { %v1487_v22 = vsel %vm1479_vm15, %v1404_v17, %v1483_v9  ;;  %v1475_v23 = vadd.f32 %v1474_v21, %v1331_v11  ;;  %v1476_v24 = vpop.f32.mrb[3].mxu1 }
 0x334   : > { %1491 = vst [vmem:[%s333_s17] sm:$0xff] %v1487_v22  ;;  %v1488_v32 = vsel %vm1480_vm0, %v1406_v19, %v1484_v20  ;;  %v1477_v4 = vadd.f32 %v1476_v24, %v1331_v11 }
 0x335   : > { %1492 = vst [vmem:[%s333_s17 + $0x8] sm:$0xff] %v1488_v32  ;;  %vm1481_vm1 = vcmp.ge.f32.partialorder %v1475_v23, 0.0  ;;  %v1485_v25 = vmul.f32 0.01, %v1475_v23 }
 0x336   : > { %vm1482_vm2 = vcmp.ge.f32.partialorder %v1477_v4, 0.0  ;;  %v1486_v26 = vmul.f32 0.01, %v1477_v4 }
 0x337   : > { %v1489_v27 = vsel %vm1481_vm1, %v1475_v23, %v1485_v25 }
 0x338   : > { %1493 = vst [vmem:[%s338_s19] sm:$0xff] %v1489_v27  ;;  %v1490_v28 = vsel %vm1482_vm2, %v1477_v4, %v1486_v26 }
 0x339   : > { %1494 = vst [vmem:[%s338_s19 + $0x8] sm:$0xff] %v1490_v28 }
 0x33a PF: > { %s19_s27 = sadd.s32 1, %s1711_s27  }
 0x33b   : > { %p16_p4 = scmp.ge.s32.totalorder %s19_s27, 4  }
 0x33d   :  { %18 = sbr.rel (!%p16_p4) target bundleno = 1 (0x1), region = 100 }

</bundles_post_ra>
